<compile_context>
chip_gen: v5e
topology: v5e:2x2
jax: 0.10.0
libtpu: 0.0.40
codegen_flags: <defaults>
</compile_context>

<pallas_src>
import functools
from functools import partial

import jax
import jax.numpy as jnp
import numpy as np
from jax.experimental import pallas as pl
from jax.experimental.pallas import tpu as pltpu


# --------------------------------------------------------------------------- #
# Kernel
# --------------------------------------------------------------------------- #
def clip_layer_kernel(x_ref,
                      ln1_g_ref, ln1_b_ref,
                      wqkv_ref, bqkv_ref,
                      wo_ref, bo_ref,
                      ln2_g_ref, ln2_b_ref,
                      w1_ref, b1_ref, w2_ref, b2_ref,
                      o_ref,
                      *, heads, mlp_block_i):
    Bb, S, E = x_ref.shape
    hd = E // heads
    M = Bb * S
    scale = 1.0 / float(np.sqrt(hd))
    eps = 1e-5
    cdt = wqkv_ref.dtype                       # MXU compute dtype (bf16 default)
    approx_recip = jnp.dtype(cdt) != jnp.dtype(jnp.float32)

    # Flatten the packed sequences into one (M, E) slab for the big matmuls.
    x = x_ref[...].astype(jnp.float32).reshape(M, E)

    def layernorm(v, g_ref, b_ref):
        mu = jnp.mean(v, axis=-1, keepdims=True)
        # E[x^2] - mu^2 (one fewer full pass); clamp against cancellation.
        var = jnp.maximum(jnp.mean(v * v, axis=-1, keepdims=True) - mu * mu, 0.0)
        return (v - mu) * jax.lax.rsqrt(var + eps) * g_ref[0] + b_ref[0]

    # ---- self-attention branch -------------------------------------------
    h = layernorm(x, ln1_g_ref, ln1_b_ref).astype(cdt)              # (M, E)
    qkv = jnp.dot(h, wqkv_ref[...],
                  preferred_element_type=jnp.float32) + bqkv_ref[0]  # (M, 3E)
    q = qkv[:, 0 * E:1 * E].astype(cdt).reshape(Bb, S, E)
    k = qkv[:, 1 * E:2 * E].astype(cdt).reshape(Bb, S, E)
    v = qkv[:, 2 * E:3 * E].astype(cdt).reshape(Bb, S, E)

    # TODO(synk): optional attention mask (CLIP text causal mask) not supported;
    # this implements the mask=None path only.
    # TODO(synk): pad S to a multiple of 128 (with -inf masked score columns) in
    # the wrapper for lane-dense attention when S is 77/257.
    head_outs = []
    for hh in range(heads):
        sl = slice(hh * hd, (hh + 1) * hd)
        qh, kh, vh = q[:, :, sl], k[:, :, sl], v[:, :, sl]          # (Bb, S, hd)
        s = jnp.einsum("bqd,bkd->bqk", qh, kh,
                       preferred_element_type=jnp.float32) * scale
        s = s - jnp.max(s, axis=-1, keepdims=True)
        p = jnp.exp(s)
        denom = jnp.sum(p, axis=-1, keepdims=True)
        if approx_recip:
            p = p * pl.reciprocal(denom, approx=True)
        else:
            p = p / denom
        out_h = jnp.einsum("bqk,bkd->bqd", p.astype(cdt), vh,
                           preferred_element_type=jnp.float32)       # (Bb, S, hd)
        head_outs.append(out_h.astype(cdt))

    # Assemble the per-head outputs as a VALUE (no scratch, no masked stores)
    # and do ONE K=E out-projection matmul.
    attn = jnp.concatenate(head_outs, axis=-1).reshape(M, E)        # (M, E) cdt
    attn_proj = jnp.dot(attn, wo_ref[...],
                        preferred_element_type=jnp.float32) + bo_ref[0]

    x = x + attn_proj                                               # residual 1

    # ---- MLP branch --------------------------------------------------------
    h2 = layernorm(x, ln2_g_ref, ln2_b_ref).astype(cdt)
    inter = w1_ref.shape[1]

    if mlp_block_i is None or mlp_block_i >= inter:
        m = (jnp.dot(h2, w1_ref[...], preferred_element_type=jnp.float32)
             + b1_ref[0]).astype(cdt)
        m = m * jax.nn.sigmoid(1.702 * m)                           # quick_gelu
        mlp = jnp.dot(m, w2_ref[...],
                      preferred_element_type=jnp.float32) + b2_ref[0]
    else:
        # Tile the intermediate dim so the live (M, I) activation stays bounded.
        # TODO(synk): for CLIP-H-class I, additionally stream w1/w2 chunks from
        # HBM (memory_space=pl.ANY + pltpu.emit_pipeline) instead of keeping
        # them VMEM-resident.
        b1 = b1_ref[0]
        mlp = jnp.zeros((M, E), jnp.float32)
        for c0 in range(0, inter, mlp_block_i):
            c1 = c0 + mlp_block_i
            mc = (jnp.dot(h2, w1_ref[:, c0:c1],
                          preferred_element_type=jnp.float32)
                  + b1[c0:c1]).astype(cdt)
            mc = mc * jax.nn.sigmoid(1.702 * mc)                    # quick_gelu
            mlp = mlp + jnp.dot(mc, w2_ref[c0:c1, :],
                                preferred_element_type=jnp.float32)
        mlp = mlp + b2_ref[0]

    y = x + mlp                                                     # residual 2
    o_ref[...] = y.reshape(Bb, S, E).astype(o_ref.dtype)


# --------------------------------------------------------------------------- #
# Heuristics / feature probes
# --------------------------------------------------------------------------- #
def _pick_block_b(B, S, *, target_rows=256, max_bb=8):
    """MXU-fill-aware batch packing: choose block_b dividing B so that
    M = block_b*S >= target_rows (256 for the 256-row MXU on v6e/v7x, pass 128
    on v5e), while keeping >= 2 grid steps when possible (v7x has 2 TCs)."""
    divisors = [d for d in range(1, min(B, max_bb) + 1) if B % d == 0]
    multi = [d for d in divisors if B // d >= 2] or divisors
    for d in multi:
        if d * S >= target_rows:
            return d
    return multi[-1]


def _pick_mlp_block_i(inter, *, max_unchunked=2048, max_chunk=1024):
    """Chunk the MLP intermediate dim when it is large (bounds the live (M, I)
    activation; matters most on 64 MiB-VMEM v7x)."""
    if inter <= max_unchunked:
        return None
    for c in range(max_chunk, 127, -128):
        if inter % c == 0:
            return c
    return None


@functools.lru_cache(maxsize=None)
def _default_vmem_limit_bytes():
    """~80% of physical VMEM: ~51 MiB on v7x (64 MiB parts), ~102 MiB on
    v5e/v6e (128 MiB parts). Leaves headroom for compiler scratch / spills."""
    try:
        cap = int(pltpu.get_tpu_info().vmem_capacity_bytes)
    except Exception:
        cap = 128 * 1024 * 1024
    return (cap * 4) // 5


def _probe_copy_kernel(x_ref, o_ref):
    o_ref[...] = x_ref[...]


@functools.lru_cache(maxsize=None)
def _single_buffer_supported():
    """Compile-time feature probe for pl.Buffered(1) on constant-index weight
    blocks (double-buffering them is pure VMEM waste).  The probe is isolated
    from the real kernel so real errors are never masked."""
    if not hasattr(pl, "Buffered"):
        return False
    try:
        spec = pl.BlockSpec((8, 128), lambda i: (0, 0),
                            pipeline_mode=pl.Buffered(1))
    except (TypeError, ValueError):
        return False
    try:
        fn = pl.pallas_call(
            _probe_copy_kernel,
            out_shape=jax.ShapeDtypeStruct((8, 128), jnp.float32),
            grid=(1,),
            in_specs=[spec],
            out_specs=pl.BlockSpec((8, 128), lambda i: (0, 0)))
        jax.jit(fn).lower(jnp.zeros((8, 128), jnp.float32)).compile()
        return True
    except Exception:
        return False


# --------------------------------------------------------------------------- #
# Wrapper
# --------------------------------------------------------------------------- #
def prepare_clip_params(params, compute_dtype=jnp.bfloat16):
    """Fuse q/k/v into a single (E, 3E) projection and cast matmul weights to
    the MXU compute dtype ONCE.  Call once per layer and reuse the result."""
    f32 = jnp.float32
    wqkv = jnp.concatenate([params["wq"], params["wk"], params["wv"]],
                           axis=1).astype(compute_dtype)
    bqkv = jnp.concatenate([params["bq"], params["bk"], params["bv"]],
                           axis=1).astype(f32)
    return {
        "ln1_g": params["ln1_g"].astype(f32), "ln1_b": params["ln1_b"].astype(f32),
        "wqkv": wqkv, "bqkv": bqkv,
        "wo": params["wo"].astype(compute_dtype), "bo": params["bo"].astype(f32),
        "ln2_g": params["ln2_g"].astype(f32), "ln2_b": params["ln2_b"].astype(f32),
        "w1": params["w1"].astype(compute_dtype), "b1": params["b1"].astype(f32),
        "w2": params["w2"].astype(compute_dtype), "b2": params["b2"].astype(f32),
    }


def clip_layer(x, prepared, heads, *, block_b=None, mlp_block_i=None,
               mxu_target_rows=256, single_buffer_weights=True,
               vmem_limit_bytes=None):
    B, S, E = x.shape
    assert E % heads == 0
    assert prepared["wqkv"].shape == (E, 3 * E)
    inter = prepared["w1"].shape[1]

    if block_b is None:
        block_b = _pick_block_b(B, S, target_rows=mxu_target_rows)
    assert B % block_b == 0
    grid = (B // block_b,)

    if mlp_block_i is None:
        mlp_block_i = _pick_mlp_block_i(inter)
    if mlp_block_i is not None:
        assert inter % mlp_block_i == 0

    if vmem_limit_bytes is None:
        vmem_limit_bytes = _default_vmem_limit_bytes()

    const_kw = ({"pipeline_mode": pl.Buffered(1)}
                if (single_buffer_weights and _single_buffer_supported()) else {})

    def vec_spec(d):
        return pl.BlockSpec((1, d), lambda b: (0, 0), **const_kw)

    def mat_spec(r, c):
        return pl.BlockSpec((r, c), lambda b: (0, 0), **const_kw)

    in_specs = [
        pl.BlockSpec((block_b, S, E), lambda b: (b, 0, 0)),   # x
        vec_spec(E), vec_spec(E),                             # ln1 gamma, beta
        mat_spec(E, 3 * E), vec_spec(3 * E),                  # fused qkv proj
        mat_spec(E, E), vec_spec(E),                          # out proj
        vec_spec(E), vec_spec(E),                             # ln2 gamma, beta
        mat_spec(E, inter), vec_spec(inter),                  # fc1
        mat_spec(inter, E), vec_spec(E),                      # fc2
    ]

    call = pl.pallas_call(
        partial(clip_layer_kernel, heads=heads, mlp_block_i=mlp_block_i),
        out_shape=jax.ShapeDtypeStruct((B, S, E), x.dtype),
        grid_spec=pltpu.PrefetchScalarGridSpec(
            num_scalar_prefetch=0,
            grid=grid,
            in_specs=in_specs,
            out_specs=pl.BlockSpec((block_b, S, E), lambda b: (b, 0, 0)),
        ),
        compiler_params=pltpu.CompilerParams(
            dimension_semantics=("parallel",),
            vmem_limit_bytes=vmem_limit_bytes,
        ),
    )

    return call(x,
                prepared["ln1_g"], prepared["ln1_b"],
                prepared["wqkv"], prepared["bqkv"],
                prepared["wo"], prepared["bo"],
                prepared["ln2_g"], prepared["ln2_b"],
                prepared["w1"], prepared["b1"],
                prepared["w2"], prepared["b2"])


# --------------------------------------------------------------------------- #
# Pure-JAX f32 reference (mirrors the PyTorch forward)
# --------------------------------------------------------------------------- #
def clip_layer_ref(x, params, heads):
    B, S, E = x.shape
    hd = E // heads
    eps = 1e-5

    def ln(v, g, b):
        mu = jnp.mean(v, -1, keepdims=True)
        var = jnp.mean((v - mu) ** 2, -1, keepdims=True)
        return (v - mu) / jnp.sqrt(var + eps) * g[0] + b[0]

    h = ln(x, params["ln1_g"], params["ln1_b"])
    q = h @ params["wq"] + params["bq"][0]
    k = h @ params["wk"] + params["bk"][0]
    v = h @ params["wv"] + params["bv"][0]
    q = q.reshape(B, S, heads, hd).transpose(0, 2, 1, 3)
    k = k.reshape(B, S, heads, hd).transpose(0, 2, 1, 3)
    v = v.reshape(B, S, heads, hd).transpose(0, 2, 1, 3)
    s = jnp.einsum("bhqd,bhkd->bhqk", q, k) / np.sqrt(hd)
    p = jax.nn.softmax(s, axis=-1)
    o = jnp.einsum("bhqk,bhkd->bhqd", p, v).transpose(0, 2, 1, 3).reshape(B, S, E)
    o = o @ params["wo"] + params["bo"][0]
    x = x + o
    h2 = ln(x, params["ln2_g"], params["ln2_b"])
    m = h2 @ params["w1"] + params["b1"][0]
    m = m * jax.nn.sigmoid(1.702 * m)
    m = m @ params["w2"] + params["b2"][0]
    return x + m


if __name__ == "__main__":
    B, S, E, heads = 2, 8, 32, 4
    I = 4 * E  # intermediate_size = 128

    key = jax.random.PRNGKey(0)
    keys = jax.random.split(key, 13)

    def w(k, shape):
        return jax.random.normal(k, shape, jnp.float32) * 0.02

    params = {
        "ln1_g": jnp.ones((1, E), jnp.float32),
        "ln1_b": jnp.zeros((1, E), jnp.float32),
        "wq": w(keys[0], (E, E)), "bq": w(keys[1], (1, E)),
        "wk": w(keys[2], (E, E)), "bk": w(keys[3], (1, E)),
        "wv": w(keys[4], (E, E)), "bv": w(keys[5], (1, E)),
        "wo": w(keys[6], (E, E)), "bo": w(keys[7], (1, E)),
        "ln2_g": jnp.ones((1, E), jnp.float32),
        "ln2_b": jnp.zeros((1, E), jnp.float32),
        "w1": w(keys[8], (E, I)), "b1": w(keys[9], (1, I)),
        "w2": w(keys[10], (I, E)), "b2": w(keys[11], (1, E)),
    }

    x = jax.random.normal(keys[12], (B, S, E), jnp.float32)
    ref = clip_layer_ref(x, params, heads)

    # bf16 MXU operands, f32 accumulation -> loosened tolerance.
    prep_bf16 = prepare_clip_params(params, jnp.bfloat16)
    out_bf16 = jax.block_until_ready(clip_layer(x, prep_bf16, heads))
    np.testing.assert_allclose(np.asarray(out_bf16), np.asarray(ref),
                               rtol=2e-2, atol=2e-2)

    # f32 compute path (exact softmax reciprocal) -> tight tolerance.
    prep_f32 = prepare_clip_params(params, jnp.float32)
    out_f32 = jax.block_until_ready(clip_layer(x, prep_f32, heads))
    np.testing.assert_allclose(np.asarray(out_f32), np.asarray(ref),
                               rtol=2e-3, atol=2e-3)

    print("KERNEL_OK")
</pallas_src>

<mosaic_0001>
module attributes {stable_mosaic.version = 11 : i64} {
  func.func @clip_layer_kernel(%arg0: i32, %arg1: memref<1x8x32xf32, #tpu.memory_space<vmem>>, %arg2: memref<1x32xf32, #tpu.memory_space<vmem>>, %arg3: memref<1x32xf32, #tpu.memory_space<vmem>>, %arg4: memref<32x96xbf16, #tpu.memory_space<vmem>>, %arg5: memref<1x96xf32, #tpu.memory_space<vmem>>, %arg6: memref<32x32xbf16, #tpu.memory_space<vmem>>, %arg7: memref<1x32xf32, #tpu.memory_space<vmem>>, %arg8: memref<1x32xf32, #tpu.memory_space<vmem>>, %arg9: memref<1x32xf32, #tpu.memory_space<vmem>>, %arg10: memref<32x128xbf16, #tpu.memory_space<vmem>>, %arg11: memref<1x128xf32, #tpu.memory_space<vmem>>, %arg12: memref<128x32xbf16, #tpu.memory_space<vmem>>, %arg13: memref<1x32xf32, #tpu.memory_space<vmem>>, %arg14: memref<1x8x32xf32, #tpu.memory_space<vmem>>) attributes {dimension_semantics = [#tpu.dimension_semantics<parallel>], iteration_bounds = array<i64: 2>, scalar_prefetch = 0 : i64, scratch_operands = 0 : i64, tpu.core_type = #tpu.core_type<tc>, window_params = [{transform_indices = @transform_0, window_bounds = array<i64: 1, 8, 32>}, {pipeline_mode = #tpu.pipeline_mode<synchronous>, transform_indices = @transform_1, window_bounds = array<i64: 1, 32>}, {pipeline_mode = #tpu.pipeline_mode<synchronous>, transform_indices = @transform_2, window_bounds = array<i64: 1, 32>}, {pipeline_mode = #tpu.pipeline_mode<synchronous>, transform_indices = @transform_3, window_bounds = array<i64: 32, 96>}, {pipeline_mode = #tpu.pipeline_mode<synchronous>, transform_indices = @transform_4, window_bounds = array<i64: 1, 96>}, {pipeline_mode = #tpu.pipeline_mode<synchronous>, transform_indices = @transform_5, window_bounds = array<i64: 32, 32>}, {pipeline_mode = #tpu.pipeline_mode<synchronous>, transform_indices = @transform_6, window_bounds = array<i64: 1, 32>}, {pipeline_mode = #tpu.pipeline_mode<synchronous>, transform_indices = @transform_7, window_bounds = array<i64: 1, 32>}, {pipeline_mode = #tpu.pipeline_mode<synchronous>, transform_indices = @transform_8, window_bounds = array<i64: 1, 32>}, {pipeline_mode = #tpu.pipeline_mode<synchronous>, transform_indices = @transform_9, window_bounds = array<i64: 32, 128>}, {pipeline_mode = #tpu.pipeline_mode<synchronous>, transform_indices = @transform_10, window_bounds = array<i64: 1, 128>}, {pipeline_mode = #tpu.pipeline_mode<synchronous>, transform_indices = @transform_11, window_bounds = array<i64: 128, 32>}, {pipeline_mode = #tpu.pipeline_mode<synchronous>, transform_indices = @transform_12, window_bounds = array<i64: 1, 32>}, {transform_indices = @transform_13, window_bounds = array<i64: 1, 8, 32>}]} {
    %c0 = arith.constant 0 : index
    %c0_0 = arith.constant 0 : index
    %c0_1 = arith.constant 0 : index
    %0 = vector.load %arg1[%c0, %c0_0, %c0_1] : memref<1x8x32xf32, #tpu.memory_space<vmem>>, vector<1x8x32xf32>
    %1 = vector.shape_cast %0 : vector<1x8x32xf32> to vector<8x32xf32>
    %cst = arith.constant dense<0.000000e+00> : vector<8xf32>
    %2 = vector.multi_reduction <add>, %1, %cst [1] : vector<8x32xf32> to vector<8xf32>
    %3 = vector.shape_cast %2 : vector<8xf32> to vector<8x1xf32>
    %cst_2 = arith.constant 3.200000e+01 : f32
    %4 = vector.broadcast %cst_2 : f32 to vector<8x1xf32>
    %5 = arith.divf %3, %4 : vector<8x1xf32>
    %6 = arith.mulf %1, %1 : vector<8x32xf32>
    %cst_3 = arith.constant dense<0.000000e+00> : vector<8xf32>
    %7 = vector.multi_reduction <add>, %6, %cst_3 [1] : vector<8x32xf32> to vector<8xf32>
    %8 = vector.shape_cast %7 : vector<8xf32> to vector<8x1xf32>
    %cst_4 = arith.constant 3.200000e+01 : f32
    %9 = vector.broadcast %cst_4 : f32 to vector<8x1xf32>
    %10 = arith.divf %8, %9 : vector<8x1xf32>
    %11 = arith.mulf %5, %5 : vector<8x1xf32>
    %12 = arith.subf %10, %11 : vector<8x1xf32>
    %cst_5 = arith.constant 0.000000e+00 : f32
    %13 = vector.broadcast %cst_5 : f32 to vector<8x1xf32>
    %14 = arith.maximumf %12, %13 : vector<8x1xf32>
    %15 = vector.broadcast %5 : vector<8x1xf32> to vector<8x32xf32>
    %16 = arith.subf %1, %15 : vector<8x32xf32>
    %cst_6 = arith.constant 9.99999974E-6 : f32
    %17 = vector.broadcast %cst_6 : f32 to vector<8x1xf32>
    %18 = arith.addf %14, %17 : vector<8x1xf32>
    %19 = math.rsqrt %18 : vector<8x1xf32>
    %20 = vector.broadcast %19 : vector<8x1xf32> to vector<8x32xf32>
    %21 = arith.mulf %16, %20 : vector<8x32xf32>
    %c0_7 = arith.constant 0 : index
    %c0_8 = arith.constant 0 : index
    %22 = vector.load %arg2[%c0_7, %c0_8] : memref<1x32xf32, #tpu.memory_space<vmem>>, vector<1x32xf32>
    %23 = vector.shape_cast %22 : vector<1x32xf32> to vector<32xf32>
    %24 = vector.shape_cast %23 : vector<32xf32> to vector<1x32xf32>
    %25 = vector.broadcast %24 : vector<1x32xf32> to vector<8x32xf32>
    %26 = arith.mulf %21, %25 : vector<8x32xf32>
    %c0_9 = arith.constant 0 : index
    %c0_10 = arith.constant 0 : index
    %27 = vector.load %arg3[%c0_9, %c0_10] : memref<1x32xf32, #tpu.memory_space<vmem>>, vector<1x32xf32>
    %28 = vector.shape_cast %27 : vector<1x32xf32> to vector<32xf32>
    %29 = vector.shape_cast %28 : vector<32xf32> to vector<1x32xf32>
    %30 = vector.broadcast %29 : vector<1x32xf32> to vector<8x32xf32>
    %31 = arith.addf %26, %30 : vector<8x32xf32>
    %32 = arith.truncf %31 : vector<8x32xf32> to vector<8x32xbf16>
    %c0_11 = arith.constant 0 : index
    %c0_12 = arith.constant 0 : index
    %33 = vector.load %arg4[%c0_11, %c0_12] : memref<32x96xbf16, #tpu.memory_space<vmem>>, vector<32x96xbf16>
    %cst_13 = arith.constant dense<0.000000e+00> : vector<8x96xf32>
    %34 = tpu.matmul %32, %33, %cst_13 {dimension_numbers = #tpu.dot_dimension_numbers<[1], [0], [0], [1], [0, 0, 1, 1], [], []>} : vector<8x32xbf16>, vector<32x96xbf16>, vector<8x96xf32> -> vector<8x96xf32>
    %c0_14 = arith.constant 0 : index
    %c0_15 = arith.constant 0 : index
    %35 = vector.load %arg5[%c0_14, %c0_15] : memref<1x96xf32, #tpu.memory_space<vmem>>, vector<1x96xf32>
    %36 = vector.shape_cast %35 : vector<1x96xf32> to vector<96xf32>
    %37 = vector.shape_cast %36 : vector<96xf32> to vector<1x96xf32>
    %38 = vector.broadcast %37 : vector<1x96xf32> to vector<8x96xf32>
    %39 = arith.addf %34, %38 : vector<8x96xf32>
    %40 = vector.extract_strided_slice %39 {offsets = [0, 0], sizes = [8, 32], strides = [1, 1]} : vector<8x96xf32> to vector<8x32xf32>
    %41 = arith.truncf %40 : vector<8x32xf32> to vector<8x32xbf16>
    %42 = vector.shape_cast %41 : vector<8x32xbf16> to vector<1x8x32xbf16>
    %43 = vector.extract_strided_slice %39 {offsets = [0, 32], sizes = [8, 32], strides = [1, 1]} : vector<8x96xf32> to vector<8x32xf32>
    %44 = arith.truncf %43 : vector<8x32xf32> to vector<8x32xbf16>
    %45 = vector.shape_cast %44 : vector<8x32xbf16> to vector<1x8x32xbf16>
    %46 = vector.extract_strided_slice %39 {offsets = [0, 64], sizes = [8, 32], strides = [1, 1]} : vector<8x96xf32> to vector<8x32xf32>
    %47 = arith.truncf %46 : vector<8x32xf32> to vector<8x32xbf16>
    %48 = vector.shape_cast %47 : vector<8x32xbf16> to vector<1x8x32xbf16>
    %49 = vector.extract_strided_slice %42 {offsets = [0, 0, 0], sizes = [1, 8, 8], strides = [1, 1, 1]} : vector<1x8x32xbf16> to vector<1x8x8xbf16>
    %50 = vector.extract_strided_slice %45 {offsets = [0, 0, 0], sizes = [1, 8, 8], strides = [1, 1, 1]} : vector<1x8x32xbf16> to vector<1x8x8xbf16>
    %51 = vector.extract_strided_slice %48 {offsets = [0, 0, 0], sizes = [1, 8, 8], strides = [1, 1, 1]} : vector<1x8x32xbf16> to vector<1x8x8xbf16>
    "tpu.trace_start"() <{level = 10 : i32, message = "bqd,bkd->bqk"}> : () -> ()
    %cst_16 = arith.constant dense<0.000000e+00> : vector<1x8x8xf32>
    %52 = tpu.matmul %49, %50, %cst_16 {dimension_numbers = #tpu.dot_dimension_numbers<[2], [2], [1], [1], [0, 0, 0, 1, 1, 1], [0], [0]>} : vector<1x8x8xbf16>, vector<1x8x8xbf16>, vector<1x8x8xf32> -> vector<1x8x8xf32>
    "tpu.trace_stop"() : () -> ()
    %cst_17 = arith.constant 0.353553385 : f32
    %53 = vector.broadcast %cst_17 : f32 to vector<1x8x8xf32>
    %54 = arith.mulf %52, %53 : vector<1x8x8xf32>
    %cst_18 = arith.constant dense<0xFF800000> : vector<1x8xf32>
    %55 = vector.multi_reduction <maximumf>, %54, %cst_18 [2] : vector<1x8x8xf32> to vector<1x8xf32>
    %56 = vector.shape_cast %55 : vector<1x8xf32> to vector<1x8x1xf32>
    %57 = vector.broadcast %56 : vector<1x8x1xf32> to vector<1x8x8xf32>
    %58 = arith.subf %54, %57 : vector<1x8x8xf32>
    %59 = math.exp %58 : vector<1x8x8xf32>
    %cst_19 = arith.constant dense<0.000000e+00> : vector<1x8xf32>
    %60 = vector.multi_reduction <add>, %59, %cst_19 [2] : vector<1x8x8xf32> to vector<1x8xf32>
    %61 = vector.shape_cast %60 : vector<1x8xf32> to vector<1x8x1xf32>
    %62 = tpu.reciprocal %61 {approx = true} : vector<1x8x1xf32> -> vector<1x8x1xf32>
    %63 = vector.broadcast %62 : vector<1x8x1xf32> to vector<1x8x8xf32>
    %64 = arith.mulf %59, %63 : vector<1x8x8xf32>
    %65 = arith.truncf %64 : vector<1x8x8xf32> to vector<1x8x8xbf16>
    "tpu.trace_start"() <{level = 10 : i32, message = "bqk,bkd->bqd"}> : () -> ()
    %cst_20 = arith.constant dense<0.000000e+00> : vector<1x8x8xf32>
    %66 = tpu.matmul %65, %51, %cst_20 {dimension_numbers = #tpu.dot_dimension_numbers<[2], [1], [1], [2], [0, 0, 0, 1, 1, 2], [0], [0]>} : vector<1x8x8xbf16>, vector<1x8x8xbf16>, vector<1x8x8xf32> -> vector<1x8x8xf32>
    "tpu.trace_stop"() : () -> ()
    %67 = arith.truncf %66 : vector<1x8x8xf32> to vector<1x8x8xbf16>
    %68 = vector.extract_strided_slice %42 {offsets = [0, 0, 8], sizes = [1, 8, 8], strides = [1, 1, 1]} : vector<1x8x32xbf16> to vector<1x8x8xbf16>
    %69 = vector.extract_strided_slice %45 {offsets = [0, 0, 8], sizes = [1, 8, 8], strides = [1, 1, 1]} : vector<1x8x32xbf16> to vector<1x8x8xbf16>
    %70 = vector.extract_strided_slice %48 {offsets = [0, 0, 8], sizes = [1, 8, 8], strides = [1, 1, 1]} : vector<1x8x32xbf16> to vector<1x8x8xbf16>
    "tpu.trace_start"() <{level = 10 : i32, message = "bqd,bkd->bqk"}> : () -> ()
    %cst_21 = arith.constant dense<0.000000e+00> : vector<1x8x8xf32>
    %71 = tpu.matmul %68, %69, %cst_21 {dimension_numbers = #tpu.dot_dimension_numbers<[2], [2], [1], [1], [0, 0, 0, 1, 1, 1], [0], [0]>} : vector<1x8x8xbf16>, vector<1x8x8xbf16>, vector<1x8x8xf32> -> vector<1x8x8xf32>
    "tpu.trace_stop"() : () -> ()
    %cst_22 = arith.constant 0.353553385 : f32
    %72 = vector.broadcast %cst_22 : f32 to vector<1x8x8xf32>
    %73 = arith.mulf %71, %72 : vector<1x8x8xf32>
    %cst_23 = arith.constant dense<0xFF800000> : vector<1x8xf32>
    %74 = vector.multi_reduction <maximumf>, %73, %cst_23 [2] : vector<1x8x8xf32> to vector<1x8xf32>
    %75 = vector.shape_cast %74 : vector<1x8xf32> to vector<1x8x1xf32>
    %76 = vector.broadcast %75 : vector<1x8x1xf32> to vector<1x8x8xf32>
    %77 = arith.subf %73, %76 : vector<1x8x8xf32>
    %78 = math.exp %77 : vector<1x8x8xf32>
    %cst_24 = arith.constant dense<0.000000e+00> : vector<1x8xf32>
    %79 = vector.multi_reduction <add>, %78, %cst_24 [2] : vector<1x8x8xf32> to vector<1x8xf32>
    %80 = vector.shape_cast %79 : vector<1x8xf32> to vector<1x8x1xf32>
    %81 = tpu.reciprocal %80 {approx = true} : vector<1x8x1xf32> -> vector<1x8x1xf32>
    %82 = vector.broadcast %81 : vector<1x8x1xf32> to vector<1x8x8xf32>
    %83 = arith.mulf %78, %82 : vector<1x8x8xf32>
    %84 = arith.truncf %83 : vector<1x8x8xf32> to vector<1x8x8xbf16>
    "tpu.trace_start"() <{level = 10 : i32, message = "bqk,bkd->bqd"}> : () -> ()
    %cst_25 = arith.constant dense<0.000000e+00> : vector<1x8x8xf32>
    %85 = tpu.matmul %84, %70, %cst_25 {dimension_numbers = #tpu.dot_dimension_numbers<[2], [1], [1], [2], [0, 0, 0, 1, 1, 2], [0], [0]>} : vector<1x8x8xbf16>, vector<1x8x8xbf16>, vector<1x8x8xf32> -> vector<1x8x8xf32>
    "tpu.trace_stop"() : () -> ()
    %86 = arith.truncf %85 : vector<1x8x8xf32> to vector<1x8x8xbf16>
    %87 = vector.extract_strided_slice %42 {offsets = [0, 0, 16], sizes = [1, 8, 8], strides = [1, 1, 1]} : vector<1x8x32xbf16> to vector<1x8x8xbf16>
    %88 = vector.extract_strided_slice %45 {offsets = [0, 0, 16], sizes = [1, 8, 8], strides = [1, 1, 1]} : vector<1x8x32xbf16> to vector<1x8x8xbf16>
    %89 = vector.extract_strided_slice %48 {offsets = [0, 0, 16], sizes = [1, 8, 8], strides = [1, 1, 1]} : vector<1x8x32xbf16> to vector<1x8x8xbf16>
    "tpu.trace_start"() <{level = 10 : i32, message = "bqd,bkd->bqk"}> : () -> ()
    %cst_26 = arith.constant dense<0.000000e+00> : vector<1x8x8xf32>
    %90 = tpu.matmul %87, %88, %cst_26 {dimension_numbers = #tpu.dot_dimension_numbers<[2], [2], [1], [1], [0, 0, 0, 1, 1, 1], [0], [0]>} : vector<1x8x8xbf16>, vector<1x8x8xbf16>, vector<1x8x8xf32> -> vector<1x8x8xf32>
    "tpu.trace_stop"() : () -> ()
    %cst_27 = arith.constant 0.353553385 : f32
    %91 = vector.broadcast %cst_27 : f32 to vector<1x8x8xf32>
    %92 = arith.mulf %90, %91 : vector<1x8x8xf32>
    %cst_28 = arith.constant dense<0xFF800000> : vector<1x8xf32>
    %93 = vector.multi_reduction <maximumf>, %92, %cst_28 [2] : vector<1x8x8xf32> to vector<1x8xf32>
    %94 = vector.shape_cast %93 : vector<1x8xf32> to vector<1x8x1xf32>
    %95 = vector.broadcast %94 : vector<1x8x1xf32> to vector<1x8x8xf32>
    %96 = arith.subf %92, %95 : vector<1x8x8xf32>
    %97 = math.exp %96 : vector<1x8x8xf32>
    %cst_29 = arith.constant dense<0.000000e+00> : vector<1x8xf32>
    %98 = vector.multi_reduction <add>, %97, %cst_29 [2] : vector<1x8x8xf32> to vector<1x8xf32>
    %99 = vector.shape_cast %98 : vector<1x8xf32> to vector<1x8x1xf32>
    %100 = tpu.reciprocal %99 {approx = true} : vector<1x8x1xf32> -> vector<1x8x1xf32>
    %101 = vector.broadcast %100 : vector<1x8x1xf32> to vector<1x8x8xf32>
    %102 = arith.mulf %97, %101 : vector<1x8x8xf32>
    %103 = arith.truncf %102 : vector<1x8x8xf32> to vector<1x8x8xbf16>
    "tpu.trace_start"() <{level = 10 : i32, message = "bqk,bkd->bqd"}> : () -> ()
    %cst_30 = arith.constant dense<0.000000e+00> : vector<1x8x8xf32>
    %104 = tpu.matmul %103, %89, %cst_30 {dimension_numbers = #tpu.dot_dimension_numbers<[2], [1], [1], [2], [0, 0, 0, 1, 1, 2], [0], [0]>} : vector<1x8x8xbf16>, vector<1x8x8xbf16>, vector<1x8x8xf32> -> vector<1x8x8xf32>
    "tpu.trace_stop"() : () -> ()
    %105 = arith.truncf %104 : vector<1x8x8xf32> to vector<1x8x8xbf16>
    %106 = vector.extract_strided_slice %42 {offsets = [0, 0, 24], sizes = [1, 8, 8], strides = [1, 1, 1]} : vector<1x8x32xbf16> to vector<1x8x8xbf16>
    %107 = vector.extract_strided_slice %45 {offsets = [0, 0, 24], sizes = [1, 8, 8], strides = [1, 1, 1]} : vector<1x8x32xbf16> to vector<1x8x8xbf16>
    %108 = vector.extract_strided_slice %48 {offsets = [0, 0, 24], sizes = [1, 8, 8], strides = [1, 1, 1]} : vector<1x8x32xbf16> to vector<1x8x8xbf16>
    "tpu.trace_start"() <{level = 10 : i32, message = "bqd,bkd->bqk"}> : () -> ()
    %cst_31 = arith.constant dense<0.000000e+00> : vector<1x8x8xf32>
    %109 = tpu.matmul %106, %107, %cst_31 {dimension_numbers = #tpu.dot_dimension_numbers<[2], [2], [1], [1], [0, 0, 0, 1, 1, 1], [0], [0]>} : vector<1x8x8xbf16>, vector<1x8x8xbf16>, vector<1x8x8xf32> -> vector<1x8x8xf32>
    "tpu.trace_stop"() : () -> ()
    %cst_32 = arith.constant 0.353553385 : f32
    %110 = vector.broadcast %cst_32 : f32 to vector<1x8x8xf32>
    %111 = arith.mulf %109, %110 : vector<1x8x8xf32>
    %cst_33 = arith.constant dense<0xFF800000> : vector<1x8xf32>
    %112 = vector.multi_reduction <maximumf>, %111, %cst_33 [2] : vector<1x8x8xf32> to vector<1x8xf32>
    %113 = vector.shape_cast %112 : vector<1x8xf32> to vector<1x8x1xf32>
    %114 = vector.broadcast %113 : vector<1x8x1xf32> to vector<1x8x8xf32>
    %115 = arith.subf %111, %114 : vector<1x8x8xf32>
    %116 = math.exp %115 : vector<1x8x8xf32>
    %cst_34 = arith.constant dense<0.000000e+00> : vector<1x8xf32>
    %117 = vector.multi_reduction <add>, %116, %cst_34 [2] : vector<1x8x8xf32> to vector<1x8xf32>
    %118 = vector.shape_cast %117 : vector<1x8xf32> to vector<1x8x1xf32>
    %119 = tpu.reciprocal %118 {approx = true} : vector<1x8x1xf32> -> vector<1x8x1xf32>
    %120 = vector.broadcast %119 : vector<1x8x1xf32> to vector<1x8x8xf32>
    %121 = arith.mulf %116, %120 : vector<1x8x8xf32>
    %122 = arith.truncf %121 : vector<1x8x8xf32> to vector<1x8x8xbf16>
    "tpu.trace_start"() <{level = 10 : i32, message = "bqk,bkd->bqd"}> : () -> ()
    %cst_35 = arith.constant dense<0.000000e+00> : vector<1x8x8xf32>
    %123 = tpu.matmul %122, %108, %cst_35 {dimension_numbers = #tpu.dot_dimension_numbers<[2], [1], [1], [2], [0, 0, 0, 1, 1, 2], [0], [0]>} : vector<1x8x8xbf16>, vector<1x8x8xbf16>, vector<1x8x8xf32> -> vector<1x8x8xf32>
    "tpu.trace_stop"() : () -> ()
    %124 = arith.truncf %123 : vector<1x8x8xf32> to vector<1x8x8xbf16>
    %125 = tpu.concatenate %67, %86, %105, %124 in 2 : vector<1x8x8xbf16>, vector<1x8x8xbf16>, vector<1x8x8xbf16>, vector<1x8x8xbf16> -> vector<1x8x32xbf16>
    %126 = vector.shape_cast %125 : vector<1x8x32xbf16> to vector<8x32xbf16>
    %c0_36 = arith.constant 0 : index
    %c0_37 = arith.constant 0 : index
    %127 = vector.load %arg6[%c0_36, %c0_37] : memref<32x32xbf16, #tpu.memory_space<vmem>>, vector<32x32xbf16>
    %cst_38 = arith.constant dense<0.000000e+00> : vector<8x32xf32>
    %128 = tpu.matmul %126, %127, %cst_38 {dimension_numbers = #tpu.dot_dimension_numbers<[1], [0], [0], [1], [0, 0, 1, 1], [], []>} : vector<8x32xbf16>, vector<32x32xbf16>, vector<8x32xf32> -> vector<8x32xf32>
    %c0_39 = arith.constant 0 : index
    %c0_40 = arith.constant 0 : index
    %129 = vector.load %arg7[%c0_39, %c0_40] : memref<1x32xf32, #tpu.memory_space<vmem>>, vector<1x32xf32>
    %130 = vector.shape_cast %129 : vector<1x32xf32> to vector<32xf32>
    %131 = vector.shape_cast %130 : vector<32xf32> to vector<1x32xf32>
    %132 = vector.broadcast %131 : vector<1x32xf32> to vector<8x32xf32>
    %133 = arith.addf %128, %132 : vector<8x32xf32>
    %134 = arith.addf %1, %133 : vector<8x32xf32>
    %cst_41 = arith.constant dense<0.000000e+00> : vector<8xf32>
    %135 = vector.multi_reduction <add>, %134, %cst_41 [1] : vector<8x32xf32> to vector<8xf32>
    %136 = vector.shape_cast %135 : vector<8xf32> to vector<8x1xf32>
    %cst_42 = arith.constant 3.200000e+01 : f32
    %137 = vector.broadcast %cst_42 : f32 to vector<8x1xf32>
    %138 = arith.divf %136, %137 : vector<8x1xf32>
    %139 = arith.mulf %134, %134 : vector<8x32xf32>
    %cst_43 = arith.constant dense<0.000000e+00> : vector<8xf32>
    %140 = vector.multi_reduction <add>, %139, %cst_43 [1] : vector<8x32xf32> to vector<8xf32>
    %141 = vector.shape_cast %140 : vector<8xf32> to vector<8x1xf32>
    %cst_44 = arith.constant 3.200000e+01 : f32
    %142 = vector.broadcast %cst_44 : f32 to vector<8x1xf32>
    %143 = arith.divf %141, %142 : vector<8x1xf32>
    %144 = arith.mulf %138, %138 : vector<8x1xf32>
    %145 = arith.subf %143, %144 : vector<8x1xf32>
    %cst_45 = arith.constant 0.000000e+00 : f32
    %146 = vector.broadcast %cst_45 : f32 to vector<8x1xf32>
    %147 = arith.maximumf %145, %146 : vector<8x1xf32>
    %148 = vector.broadcast %138 : vector<8x1xf32> to vector<8x32xf32>
    %149 = arith.subf %134, %148 : vector<8x32xf32>
    %cst_46 = arith.constant 9.99999974E-6 : f32
    %150 = vector.broadcast %cst_46 : f32 to vector<8x1xf32>
    %151 = arith.addf %147, %150 : vector<8x1xf32>
    %152 = math.rsqrt %151 : vector<8x1xf32>
    %153 = vector.broadcast %152 : vector<8x1xf32> to vector<8x32xf32>
    %154 = arith.mulf %149, %153 : vector<8x32xf32>
    %c0_47 = arith.constant 0 : index
    %c0_48 = arith.constant 0 : index
    %155 = vector.load %arg8[%c0_47, %c0_48] : memref<1x32xf32, #tpu.memory_space<vmem>>, vector<1x32xf32>
    %156 = vector.shape_cast %155 : vector<1x32xf32> to vector<32xf32>
    %157 = vector.shape_cast %156 : vector<32xf32> to vector<1x32xf32>
    %158 = vector.broadcast %157 : vector<1x32xf32> to vector<8x32xf32>
    %159 = arith.mulf %154, %158 : vector<8x32xf32>
    %c0_49 = arith.constant 0 : index
    %c0_50 = arith.constant 0 : index
    %160 = vector.load %arg9[%c0_49, %c0_50] : memref<1x32xf32, #tpu.memory_space<vmem>>, vector<1x32xf32>
    %161 = vector.shape_cast %160 : vector<1x32xf32> to vector<32xf32>
    %162 = vector.shape_cast %161 : vector<32xf32> to vector<1x32xf32>
    %163 = vector.broadcast %162 : vector<1x32xf32> to vector<8x32xf32>
    %164 = arith.addf %159, %163 : vector<8x32xf32>
    %165 = arith.truncf %164 : vector<8x32xf32> to vector<8x32xbf16>
    %c0_51 = arith.constant 0 : index
    %c0_52 = arith.constant 0 : index
    %166 = vector.load %arg10[%c0_51, %c0_52] : memref<32x128xbf16, #tpu.memory_space<vmem>>, vector<32x128xbf16>
    %cst_53 = arith.constant dense<0.000000e+00> : vector<8x128xf32>
    %167 = tpu.matmul %165, %166, %cst_53 {dimension_numbers = #tpu.dot_dimension_numbers<[1], [0], [0], [1], [0, 0, 1, 1], [], []>} : vector<8x32xbf16>, vector<32x128xbf16>, vector<8x128xf32> -> vector<8x128xf32>
    %c0_54 = arith.constant 0 : index
    %c0_55 = arith.constant 0 : index
    %168 = vector.load %arg11[%c0_54, %c0_55] : memref<1x128xf32, #tpu.memory_space<vmem>>, vector<1x128xf32>
    %169 = vector.shape_cast %168 : vector<1x128xf32> to vector<128xf32>
    %170 = vector.shape_cast %169 : vector<128xf32> to vector<1x128xf32>
    %171 = vector.broadcast %170 : vector<1x128xf32> to vector<8x128xf32>
    %172 = arith.addf %167, %171 : vector<8x128xf32>
    %173 = arith.truncf %172 : vector<8x128xf32> to vector<8x128xbf16>
    %cst_56 = arith.constant 1.703130e+00 : bf16
    %174 = vector.broadcast %cst_56 : bf16 to vector<8x128xbf16>
    %175 = arith.mulf %174, %173 : vector<8x128xbf16>
    %176 = arith.negf %175 : vector<8x128xbf16>
    %177 = math.exp %176 : vector<8x128xbf16>
    %cst_57 = arith.constant 1.000000e+00 : bf16
    %178 = vector.broadcast %cst_57 : bf16 to vector<8x128xbf16>
    %179 = arith.addf %178, %177 : vector<8x128xbf16>
    %180 = arith.divf %178, %179 : vector<8x128xbf16>
    %181 = arith.mulf %173, %180 : vector<8x128xbf16>
    %c0_58 = arith.constant 0 : index
    %c0_59 = arith.constant 0 : index
    %182 = vector.load %arg12[%c0_58, %c0_59] : memref<128x32xbf16, #tpu.memory_space<vmem>>, vector<128x32xbf16>
    %cst_60 = arith.constant dense<0.000000e+00> : vector<8x32xf32>
    %183 = tpu.matmul %181, %182, %cst_60 {dimension_numbers = #tpu.dot_dimension_numbers<[1], [0], [0], [1], [0, 0, 1, 1], [], []>} : vector<8x128xbf16>, vector<128x32xbf16>, vector<8x32xf32> -> vector<8x32xf32>
    %c0_61 = arith.constant 0 : index
    %c0_62 = arith.constant 0 : index
    %184 = vector.load %arg13[%c0_61, %c0_62] : memref<1x32xf32, #tpu.memory_space<vmem>>, vector<1x32xf32>
    %185 = vector.shape_cast %184 : vector<1x32xf32> to vector<32xf32>
    %186 = vector.shape_cast %185 : vector<32xf32> to vector<1x32xf32>
    %187 = vector.broadcast %186 : vector<1x32xf32> to vector<8x32xf32>
    %188 = arith.addf %183, %187 : vector<8x32xf32>
    %189 = arith.addf %134, %188 : vector<8x32xf32>
    %190 = vector.shape_cast %189 : vector<8x32xf32> to vector<1x8x32xf32>
    %c0_63 = arith.constant 0 : index
    %c0_64 = arith.constant 0 : index
    %c0_65 = arith.constant 0 : index
    %191 = vector.load %arg14[%c0_63, %c0_64, %c0_65] : memref<1x8x32xf32, #tpu.memory_space<vmem>>, vector<1x8x32xf32>
    tpu.vector_store %arg14[%c0_63, %c0_64, %c0_65], %190 {strides = array<i32>} : memref<1x8x32xf32, #tpu.memory_space<vmem>>, vector<1x8x32xf32>,
    return
  }
  func.func @transform_0(%arg0: i32) -> (i32, i32, i32) {
    %c0_i32 = arith.constant 0 : i32
    %c0_i32_0 = arith.constant 0 : i32
    %c0_i32_1 = arith.constant 0 : i32
    return %arg0, %c0_i32, %c0_i32_0 : i32, i32, i32
  }
  func.func @transform_1(%arg0: i32) -> (i32, i32) {
    %c0_i32 = arith.constant 0 : i32
    %c0_i32_0 = arith.constant 0 : i32
    %c0_i32_1 = arith.constant 0 : i32
    return %c0_i32, %c0_i32_0 : i32, i32
  }
  func.func @transform_2(%arg0: i32) -> (i32, i32) {
    %c0_i32 = arith.constant 0 : i32
    %c0_i32_0 = arith.constant 0 : i32
    %c0_i32_1 = arith.constant 0 : i32
    return %c0_i32, %c0_i32_0 : i32, i32
  }
  func.func @transform_3(%arg0: i32) -> (i32, i32) {
    %c0_i32 = arith.constant 0 : i32
    %c0_i32_0 = arith.constant 0 : i32
    %c0_i32_1 = arith.constant 0 : i32
    return %c0_i32, %c0_i32_0 : i32, i32
  }
  func.func @transform_4(%arg0: i32) -> (i32, i32) {
    %c0_i32 = arith.constant 0 : i32
    %c0_i32_0 = arith.constant 0 : i32
    %c0_i32_1 = arith.constant 0 : i32
    return %c0_i32, %c0_i32_0 : i32, i32
  }
  func.func @transform_5(%arg0: i32) -> (i32, i32) {
    %c0_i32 = arith.constant 0 : i32
    %c0_i32_0 = arith.constant 0 : i32
    %c0_i32_1 = arith.constant 0 : i32
    return %c0_i32, %c0_i32_0 : i32, i32
  }
  func.func @transform_6(%arg0: i32) -> (i32, i32) {
    %c0_i32 = arith.constant 0 : i32
    %c0_i32_0 = arith.constant 0 : i32
    %c0_i32_1 = arith.constant 0 : i32
    return %c0_i32, %c0_i32_0 : i32, i32
  }
  func.func @transform_7(%arg0: i32) -> (i32, i32) {
    %c0_i32 = arith.constant 0 : i32
    %c0_i32_0 = arith.constant 0 : i32
    %c0_i32_1 = arith.constant 0 : i32
    return %c0_i32, %c0_i32_0 : i32, i32
  }
  func.func @transform_8(%arg0: i32) -> (i32, i32) {
    %c0_i32 = arith.constant 0 : i32
    %c0_i32_0 = arith.constant 0 : i32
    %c0_i32_1 = arith.constant 0 : i32
    return %c0_i32, %c0_i32_0 : i32, i32
  }
  func.func @transform_9(%arg0: i32) -> (i32, i32) {
    %c0_i32 = arith.constant 0 : i32
    %c0_i32_0 = arith.constant 0 : i32
    %c0_i32_1 = arith.constant 0 : i32
    return %c0_i32, %c0_i32_0 : i32, i32
  }
  func.func @transform_10(%arg0: i32) -> (i32, i32) {
    %c0_i32 = arith.constant 0 : i32
    %c0_i32_0 = arith.constant 0 : i32
    %c0_i32_1 = arith.constant 0 : i32
    return %c0_i32, %c0_i32_0 : i32, i32
  }
  func.func @transform_11(%arg0: i32) -> (i32, i32) {
    %c0_i32 = arith.constant 0 : i32
    %c0_i32_0 = arith.constant 0 : i32
    %c0_i32_1 = arith.constant 0 : i32
    return %c0_i32, %c0_i32_0 : i32, i32
  }
  func.func @transform_12(%arg0: i32) -> (i32, i32) {
    %c0_i32 = arith.constant 0 : i32
    %c0_i32_0 = arith.constant 0 : i32
    %c0_i32_1 = arith.constant 0 : i32
    return %c0_i32, %c0_i32_0 : i32, i32
  }
  func.func @transform_13(%arg0: i32) -> (i32, i32, i32) {
    %c0_i32 = arith.constant 0 : i32
    %c0_i32_0 = arith.constant 0 : i32
    %c0_i32_1 = arith.constant 0 : i32
    return %arg0, %c0_i32, %c0_i32_0 : i32, i32, i32
  }
}

</mosaic_0001>

<bundles_post_ra>
// kernel: tpu_custom_call.1
= control target key start
LH: loop header
LB: loop body
LE: loop exit
PB: predicated region body
PF: predicated region fallthrough
CT: control target
= control target key end

     0   :  { %s1622_s0 = inlined_call_operand.vmem [shape: f32[2,8,32], index: 0, kind: input, shape index: {}]   ;;  %s1623_s1 = inlined_call_operand.vmem [shape: f32[1,32], index: 1, kind: input, shape index: {}]   ;;  %s1624_s2 = inlined_call_operand.vmem [shape: f32[1,32], index: 2, kind: input, shape index: {}]   ;;  %s1625_s3 = inlined_call_operand.vmem [shape: bf16[32,96], index: 3, kind: input, shape index: {}]   ;;  %s1626_s4 = inlined_call_operand.vmem [shape: f32[1,96], index: 4, kind: input, shape index: {}]   ;;  %s1627_s5 = inlined_call_operand.vmem [shape: bf16[32,32], index: 5, kind: input, shape index: {}]   ;;  %s1628_s6 = inlined_call_operand.vmem [shape: f32[1,32], index: 6, kind: input, shape index: {}]   ;;  %s1629_s7 = inlined_call_operand.vmem [shape: f32[1,32], index: 7, kind: input, shape index: {}]   ;;  %s1630_s8 = inlined_call_operand.vmem [shape: f32[1,32], index: 8, kind: input, shape index: {}]   ;;  %s1631_s9 = inlined_call_operand.vmem [shape: bf16[32,128], index: 9, kind: input, shape index: {}]   ;;  %s1632_s10 = inlined_call_operand.vmem [shape: f32[1,128], index: 10, kind: input, shape index: {}]   ;;  %s1633_s11 = inlined_call_operand.vmem [shape: bf16[128,32], index: 11, kind: input, shape index: {}]   ;;  %s1634_s12 = inlined_call_operand.vmem [shape: f32[1,32], index: 12, kind: input, shape index: {}]   ;;  %s1635_s13 = inlined_call_operand.hbm [shape: f32[2,8,32], index: 13, kind: output, shape index: {}]  }
   0x1   :  { %1636 = sst [smem:[#allocation5_spill]] %s1622_s0 }
   0x2   :  { %1637 = sst [smem:[#allocation6_spill]] %s1623_s1 }
   0x3   :  { %1638 = sst [smem:[#allocation7_spill]] %s1624_s2 }
   0x4   :  { %1639 = sst [smem:[#allocation8_spill]] %s1625_s3 }
   0x5   :  { %18 = vsyncpa [#allocation3], 0 }
   0x6   :  { %20 = vsyncpa [#allocation3 + $0x1], 0  ;;  %s1401_s25 = smov 0   ;;  %s1403_s26 = smov 0  }
   0x7   :  { %s1405_s27 = smov 0   ;;  %s1407_s28 = smov 0  }
   0x8 LB: > { %s1422_s29 = sadd.s32 4294967295, %s1313_s28   ;;  %s1069_s30 = sadd.s32 4294967294, %s1313_s28   ;;  %s1313_s28 = sphi %s1407_s28, %s1649_s28   ;;  %s1309_s27 = sphi %s1405_s27, %s1648_s27   ;;  %s1305_s26 = sphi %s1403_s26, %s1647_s26   ;;  %s1301_s25 = sphi %s1401_s25, %s1646_s25  }
   0x9   : > { %s1426_s14 = sadd.s32 1, %s1313_s28   ;;  %s311_s15 = sadd.s32 1, %s1309_s27 }
   0xa   : > { %s308_s16 = ssub.s32 %s1313_s28, %s1426_s14  ;;  %p321_p0 = scmp.ne.s32.totalorder %s1309_s27, %s1305_s26 }
   0xb   : > { %p309_p1 = scmp.eq.s32.totalorder %s308_s16, 0  ;;  %p322_p2 = scmp.eq.s32.totalorder %s1422_s29, 1 }
   0xc   : > { %p327_p3 = scmp.ne.s32.totalorder %s1305_s26, %s1301_s25  ;;  %p328_p4 = scmp.eq.s32.totalorder %s1069_s30, 1 }
   0xd   : > { %s1437_s17 = scalar_select %p309_p1, %s1309_s27, %s311_s15  }
   0xe   : > { %p1439_p5 = por %p322_p2, %p321_p0  ;;  %p1443_p6 = por %p328_p4, %p327_p3 }
   0xf   : > { %p1072_p7 = scmp.ge.s32.totalorder %s1313_s28, 1  ;;  %p389_p8 = scmp.lt.s32.totalorder %s1313_s28, 3 }
  0x11   : > { %p390_p9 = pnand %p1072_p7, %p389_p8 }
  0x12   : > { %p432_p10 = scmp.lt.s32.totalorder (!%p390_p9), %s1422_s29, 1  ;;  %s1642_s0 = sld [smem:[#allocation5_spill]] (!%p390_p9) }
  0x13   : > { %393 = sbr.rel (%p390_p9) target bundleno = 2133 (0x855), region = 72  ;;  %s1643_s3 = sld [smem:[#allocation8_spill]] (!%p390_p9) }
  0x14   : > { %s1644_s1 = sld [smem:[#allocation6_spill]] (!%p390_p9)  ;;  %s1316_s16 = smov (!%p390_p9), 88  }
  0x15   : > { %s1645_s2 = sld [smem:[#allocation7_spill]] (!%p390_p9)  ;;  %s1319_s22 = smov (!%p390_p9), 72  }
  0x16   : > { %s1320_s23 = smov (!%p390_p9), 80   ;;  %s1322_s30 = smov (!%p390_p9), 104  }
  0x17   : > { %s1323_s15 = smov (!%p390_p9), 112  }
  0x18   : > { %s433_s20 = scalar_select %p432_p10, %s1422_s29, 1  ;;  %vm439_vm0 = vcmask 261120   ;;  %v1315_v4 = vmov 32.0   ;;  %v1217_v35 = vld [vmem:[%s1626_s4] ss:$0 sm:$0xff]  ;;  %vm563_vm5 = vcmask 1043456  }
  0x19   : > { %1223 = vrcp.f32 %v1315_v4  ;;  %v1147_v11 = vld [vmem:[%s1643_s3 + $0x8] sm:$0xff]  ;;  %v1146_v13 = vld [vmem:[%s1643_s3] sm:$0xff]  ;;  %vm525_vm6 = vcmask 64512   ;;  %vm773_vm7 = vcmask 130048   ;;  %vm776_vm8 = vcmask 195584  }
  0x1a   : > { %s1074_s21 = sshll.u32 %s433_s20, 3  ;;  %512 = vmatpush.bf16.msra.mxu0 %v1147_v11  ;;  %v1215_v28 = vld [vmem:[%s1644_s1] ss:$0 sm:$0xff]  ;;  %s1317_s20 = smov 64  }
  0x1b   : > { %s435_s24 = scalar_lea.vmem %s1642_s0, %s1074_s21  ;;  %v1216_v31 = vld [vmem:[%s1645_s2] ss:$0 sm:$0xff]  ;;  %s1318_s21 = smov 96  }
  0x1c   : > { %v1454_v0 = vld [vmem:[%s435_s24] sm:$0xff]  ;;  %s1321_s24 = smov 120  }
  0x1d   : > { %v440_v1 = vsel %vm439_vm0, %v1454_v0, 0.0  ;;  %v451_v2 = vmul.f32 %v1454_v0, %v1454_v0 }
  0x1e   : > { %441 = vadd.xlane.f32.xlu0 %v440_v1  ;;  %513 = vmatpush.bf16.msra.mxu0 %v1146_v13 }
  0x1f   : > { %v452_v3 = vsel %vm439_vm0, %v451_v2, 0.0  ;;  %v1224_v5 = vpop.eup %1223 }
  0x20   : > { %v444_v6 = vmul.f32 32.0, %v1224_v5  ;;  %vm448_vm1 = vweird.f32 %v1224_v5 }
  0x22   : > { %v445_v7 = vsub.f32 1.0, %v444_v6 }
  0x24   : > { %v446_v8 = vmul.f32 %v1224_v5, %v445_v7 }
  0x26   : > { %453 = vadd.xlane.f32.xlu0 %v452_v3  ;;  %v447_v9 = vadd.f32 %v1224_v5, %v446_v8 }
  0x28   : > { %v1464_v12 = vsel %vm448_vm1, %v1224_v5, %v447_v9 }
  0x91   : > { %v442_v10 = vpop.xlane.xlu0 %441 }
  0x92   : > { %v450_v14 = vmul.f32 %v1464_v12, %v442_v10 }
  0x94   : > { %v456_v16 = vmul.f32 %v450_v14, %v450_v14  ;;  %v459_v27 = vsub.f32 %v1454_v0, %v450_v14 }
  0x99   : > { %v454_v15 = vpop.xlane.xlu0 %453 }
  0x9a   : > { %v455_v17 = vmul.f32 %v454_v15, %v1464_v12 }
  0x9c   : > { %v457_v18 = vsub.f32 %v455_v17, %v456_v16 }
  0x9e   : > { %v458_v19 = vmax.f32 %v457_v18, 0.0 }
  0xa0   : > { %v460_v20 = vadd.f32 1e-05, %v458_v19 }
  0xa2   : > { %1225 = vrsqrt.f32 %v460_v20  ;;  %vm467_vm3 = vweird.f32 %v460_v20 }
  0xa8   : > { %v1226_v21 = vpop.eup %1225 }
  0xa9   : > { %v462_v22 = vmul.f32 %v1226_v21, %v460_v20  ;;  %vm468_vm2 = vweird.f32 %v1226_v21 }
  0xaa   : > { %vm469_vm4 = vmor %vm467_vm3, %vm468_vm2 }
  0xab   : > { %v463_v23 = vmul.f32 %v1226_v21, %v462_v22 }
  0xad   : > { %v464_v24 = vmul.f32 0.5, %v463_v23 }
  0xaf   : > { %v465_v25 = vsub.f32 1.5, %v464_v24 }
  0xb1   : > { %v466_v26 = vmul.f32 %v1226_v21, %v465_v25 }
  0xb3   : > { %v470_v29 = vsel %vm469_vm4, %v1226_v21, %v466_v26 }
  0xb4   : > { %v471_v30 = vmul.f32 %v470_v29, %v459_v27 }
  0xb6   : > { %v476_v32 = vmul.f32 %v1215_v28, %v471_v30 }
  0xb8   : > { %v481_v33 = vadd.f32 %v1216_v31, %v476_v32 }
  0xba   : > { %v482_v34 = vpack.c.bf16 %v481_v33, %v481_v33 }
  0xbc   : > { %1083 = vmatmul.msk.bf16.vlgmr.msra.gmra.mxu0 %vm439_vm0, %v482_v34 }
 0x139   : > { %v515_v36 = vpop.f32.mrf.mxu0 }
 0x13a   : > { %v516_v37 = vadd.f32 %v1217_v35, %v515_v36 }
 0x13c   : > { %v519_v38 = vpack.c.bf16 %v516_v37, %v516_v37 }
 0x13e   : > { %v521_v39 = vunpack.c.l.b16 %v519_v38 }
 0x140   : > { %v1482_v40 = vpack.c.b16 %v521_v39, %v521_v39 }
 0x141   : > { %v517_v41 = vpop.f32.mrf.mxu0 }
 0x142   : > { %583 = vrot.lane.b32.xlu0 %v1482_v40, %s1316_s16  ;;  %558 = vrot.lane.b32.xlu2 %v1482_v40, %s1317_s20  ;;  %s1324_s16 = smov 40   ;;  %s1325_s20 = smov 48  }
 0x143   : > { %523 = vrot.lane.b32.xlu1 %v1482_v40, %s1318_s21  ;;  %s1326_s21 = smov 56  }
 0x14a   : > { %699 = vrot.lane.b32.xlu0 %v1482_v40, %s1319_s22  ;;  %s1327_s22 = smov 16  }
 0x152   : > { %641 = vrot.lane.b32.xlu0 %v1482_v40, %s1320_s23  ;;  %s1328_s23 = smov 8  }
 0x19c   : > { %v559_v42 = vpop.permute.xlu2 %558 }
 0x19d   : > { %v565_v43 = vsel %vm563_vm5, %v559_v42, 0 }
 0x19e   : > { %574 = vmatpush.bf16.msra.mxu2 %v565_v43 }
 0x1b4   : > { %v584_v44 = vpop.permute.xlu0 %583 }
 0x1b5   : > { %v524_v45 = vpop.permute.xlu1 %523  ;;  %v589_v46 = vsel %vm525_vm6, %v584_v44, 0 }
 0x1b6   : > { %v530_v47 = vsel %vm525_vm6, %v524_v45, 0  ;;  %598 = vmatpush.bf16.xpose.msrb.mxu2 %v589_v46 }
 0x1b7   : > { %539 = vmatpush.bf16.xpose.msra.mxu1 %v530_v47 }
 0x1bc   : > { %v700_v48 = vpop.permute.xlu0 %699 }
 0x1bd   : > { %v705_v49 = vsel %vm525_vm6, %v700_v48, 0 }
 0x1be   : > { %1084 = vmatmul.msk.bf16.vlgmr.msra.gmra.mxu1 %vm525_vm6, %v519_v38  ;;  %714 = vmatpush.bf16.xpose.msra.mxu3 %v705_v49 }
 0x1c4   : > { %v642_v50 = vpop.permute.xlu0 %641 }
 0x1c5   : > { %v647_v51 = vsel %vm525_vm6, %v642_v50, 0 }
 0x1c6   : > { %656 = vmatpush.bf16.xpose.msrb.mxu0 %v647_v51 }
 0x23b   : > { %v541_v52 = vpop.f32.mrf.mxu1 }
 0x23c   : > { %v545_v53 = vmul.f32 0.35355338, %v541_v52 }
 0x23e   : > { %v546_v54 = vsel %vm525_vm6, %v545_v53, -inf }
 0x23f   : > { %547 = vmax.xlane.f32.xlu1 %v546_v54 }
 0x243   : > { %v543_v55 = vpop.f32.mrf.mxu1 }
 0x2b2   : > { %v548_v56 = vpop.xlane.xlu1 %547 }
 0x2b3   : > { %v549_v57 = vsub.f32 %v545_v53, %v548_v56 }
 0x2b5   : > { %v550_v58 = vmul.f32 1.442695, %v549_v57 }
 0x2b7   : > { %1227 = vpow2.f32 %v550_v58 }
 0x2bd   : > { %v1228_v59 = vpop.eup %1227 }
 0x2be   : > { %v552_v60 = vsel %vm525_vm6, %v1228_v59, 0.0 }
 0x2bf   : > { %553 = vadd.xlane.f32.xlu2 %v552_v60 }
 0x2d7   : > { %581 = vrot.lane.b32.xlu2 %v1482_v40, %s1321_s24  ;;  %s1329_s24 = smov 24  }
 0x2df   : > { %697 = vrot.lane.b32.xlu2 %v1482_v40, %s1322_s30 }
 0x2e7   : > { %639 = vrot.lane.b32.xlu2 %v1482_v40, %s1323_s15 }
 0x332   : > { %v554_v61 = vpop.xlane.xlu2 %553 }
 0x333   : > { %1229 = vrcp.f32 %v554_v61 }
 0x339   : > { %v1230_v62 = vpop.eup %1229 }
 0x33a   : > { %v582_v63 = vpop.permute.xlu2 %581  ;;  %v556_v1 = vmul.f32 %v1230_v62, %v1228_v59 }
 0x33c   : > { %v557_v2 = vpack.c.bf16 %v556_v1, %v556_v1 }
 0x33e   : > { %1085 = vmatmul.msk.bf16.vlgmr.msra.gmra.mxu2 %vm525_vm6, %v557_v2 }
 0x342   : > { %v698_v3 = vpop.permute.xlu2 %697 }
 0x343   : > { %1090 = vmatmul.msk.bf16.vlgmr.msra.gmra.mxu3 %vm525_vm6, %v698_v3 }
 0x34a   : > { %v640_v4 = vpop.permute.xlu2 %639 }
 0x34b   : > { %1088 = vmatmul.msk.bf16.vlgmr.msrb.gmra.mxu0 %vm525_vm6, %v640_v4 }
 0x34e   : > { %1086 = vmatmul.msk.bf16.vlgmr.msrb.gmra.mxu2 %vm525_vm6, %v582_v63 }
 0x3c1   : > { %v1504_v5 = vpop.f32.mrf.mxu2 }
 0x3c6   : > { %v716_v6 = vpop.f32.mrf.mxu3 }
 0x3c7   : > { %v720_v7 = vmul.f32 0.35355338, %v716_v6  ;;  %v1149_v6 = vld [vmem:[%s1627_s5 + $0x8] sm:$0xff] }
 0x3c8   : > { %v658_v8 = vpop.f32.mrf.mxu0  ;;  %807 = vmatpush.bf16.msra.mxu0 %v1149_v6 }
 0x3c9   : > { %v662_v9 = vmul.f32 0.35355338, %v658_v8  ;;  %v578_v10 = vpop.f32.mrf.mxu2  ;;  %v721_v11 = vsel %vm525_vm6, %v720_v7, -inf }
 0x3ca   : > { %722 = vmax.xlane.f32.xlu0 %v721_v11 }
 0x3cb   : > { %v663_v13 = vsel %vm525_vm6, %v662_v9, -inf }
 0x3cc   : > { %664 = vmax.xlane.f32.xlu2 %v663_v13 }
 0x3ce   : > { %v718_v14 = vpop.f32.mrf.mxu3 }
 0x3d0   : > { %v660_v15 = vpop.f32.mrf.mxu0 }
 0x3d1   : > { %v600_v16 = vpop.f32.mrf.mxu2 }
 0x3d2   : > { %v604_v17 = vmul.f32 0.35355338, %v600_v16  ;;  %v1218_v16 = vld [vmem:[%s1628_s6] ss:$0 sm:$0xff] }
 0x3d4   : > { %v605_v18 = vsel %vm525_vm6, %v604_v17, -inf }
 0x3d5   : > { %606 = vmax.xlane.f32.xlu1 %v605_v18 }
 0x3d9   : > { %v602_v19 = vpop.f32.mrf.mxu2 }
 0x3e4   : > { %733 = vrot.lane.b32.xlu2 %v1482_v40, %s1324_s16 }
 0x43d   : > { %v723_v30 = vpop.xlane.xlu0 %722 }
 0x43e   : > { %v724_v31 = vsub.f32 %v720_v7, %v723_v30  ;;  %v1148_v7 = vld [vmem:[%s1627_s5] sm:$0xff] }
 0x43f   : > { %v665_v20 = vpop.xlane.xlu2 %664  ;;  %808 = vmatpush.bf16.msra.mxu0 %v1148_v7 }
 0x440   : > { %v666_v21 = vsub.f32 %v662_v9, %v665_v20  ;;  %v725_v32 = vmul.f32 1.442695, %v724_v31  ;;  %v580_v9 = vpack.c.bf16 %v1504_v5, %v1504_v5 }
 0x442   : > { %v667_v22 = vmul.f32 1.442695, %v666_v21 }
 0x444   : > { %1231 = vpow2.f32 %v667_v22 }
 0x447   : > { %v734_v43 = vpop.permute.xlu2 %733 }
 0x448   : > { %v607_v23 = vpop.xlane.xlu1 %606  ;;  %v739_v47 = vsel %vm563_vm5, %v734_v43, 0 }
 0x449   : > { %v608_v24 = vsub.f32 %v604_v17, %v607_v23  ;;  %v1151_v23 = vld [vmem:[%s1631_s9 + $0x8] sm:$0xff] }
 0x44a   : > { %v1232_v25 = vpop.eup %1231 }
 0x44b   : > { %v609_v26 = vmul.f32 1.442695, %v608_v24  ;;  %v669_v27 = vsel %vm525_vm6, %v1232_v25, 0.0 }
 0x44c   : > { %670 = vadd.xlane.f32.xlu0 %v669_v27 }
 0x44d   : > { %1233 = vpow2.f32 %v609_v26 }
 0x44e   : > { %1235 = vpow2.f32 %v725_v32 }
 0x453   : > { %v1234_v28 = vpop.eup %1233 }
 0x454   : > { %v611_v29 = vsel %vm525_vm6, %v1234_v28, 0.0  ;;  %v1236_v33 = vpop.eup %1235 }
 0x455   : > { %612 = vadd.xlane.f32.xlu1 %v611_v29  ;;  %v727_v34 = vsel %vm525_vm6, %v1236_v33, 0.0 }
 0x460   : > { %675 = vrot.lane.b32.xlu0 %v1482_v40, %s1325_s20 }
 0x46e   : > { %617 = vrot.lane.b32.xlu1 %v1482_v40, %s1326_s21  ;;  %s429_s21 = sand.u32 1, %s1305_s26  }
 0x498   : > { %728 = vadd.xlane.f32.xlu1 %v727_v34 }
 0x4bf   : > { %v671_v35 = vpop.xlane.xlu0 %670 }
 0x4c0   : > { %1237 = vrcp.f32 %v671_v35 }
 0x4c6   : > { %v1238_v36 = vpop.eup %1237 }
 0x4c7   : > { %v673_v37 = vmul.f32 %v1238_v36, %v1232_v25 }
 0x4c8   : > { %v613_v39 = vpop.xlane.xlu1 %612 }
 0x4c9   : > { %v674_v42 = vpack.c.bf16 %v673_v37, %v673_v37  ;;  %1239 = vrcp.f32 %v613_v39  ;;  %v1219_v39 = vld [vmem:[%s1629_s7] ss:$0 sm:$0xff] }
 0x4cf   : > { %v1240_v40 = vpop.eup %1239 }
 0x4d0   : > { %v615_v44 = vmul.f32 %v1240_v40, %v1234_v28 }
 0x4d2   : > { %v676_v38 = vpop.permute.xlu0 %675  ;;  %v616_v48 = vpack.c.bf16 %v615_v44, %v615_v44 }
 0x4d3   : > { %v681_v41 = vsel %vm563_vm5, %v676_v38, 0 }
 0x4d4   : > { %690 = vmatpush.bf16.msrb.mxu1 %v681_v41 }
 0x4d7   : > { %1089 = vmatmul.msk.bf16.vlgmr.msrb.gmra.mxu1 %vm525_vm6, %v674_v42  ;;  %v1220_v42 = vld [vmem:[%s1630_s8] ss:$0 sm:$0xff] }
 0x4d8   : > { %880 = vmatpush.bf16.msra.mxu1 %v1151_v23 }
 0x4e0   : > { %v618_v45 = vpop.permute.xlu1 %617 }
 0x4e1   : > { %v623_v46 = vsel %vm563_vm5, %v618_v45, 0  ;;  %v1159_v45 = vld [vmem:[%s1633_s11 + $0x38] sm:$0xff] }
 0x4e2   : > { %632 = vmatpush.bf16.msra.mxu2 %v623_v46  ;;  %979 = vmatpush.bf16.msrb.mxu3 %v1159_v45  ;;  %v1158_v46 = vld [vmem:[%s1633_s11 + $0x30] sm:$0xff] }
 0x4e5   : > { %1087 = vmatmul.msk.bf16.vlgmr.msra.gmra.mxu2 %vm525_vm6, %v616_v48  ;;  %v1221_v48 = vld [vmem:[%s1632_s10] ss:$0 sm:$0xff] }
 0x4e6   : > { %748 = vmatpush.bf16.msrb.mxu2 %v739_v47  ;;  %980 = vmatpush.bf16.msrb.mxu3 %v1158_v46  ;;  %v1157_v47 = vld [vmem:[%s1633_s11 + $0x28] sm:$0xff] }
 0x4ea   : > { %981 = vmatpush.bf16.msrb.mxu3 %v1157_v47 }
 0x50b   : > { %v729_v49 = vpop.xlane.xlu1 %728 }
 0x50c   : > { %1241 = vrcp.f32 %v729_v49  ;;  %v1156_v49 = vld [vmem:[%s1633_s11 + $0x20] sm:$0xff] }
 0x50d   : > { %982 = vmatpush.bf16.msrb.mxu3 %v1156_v49 }
 0x512   : > { %v1242_v50 = vpop.eup %1241 }
 0x513   : > { %v731_v51 = vmul.f32 %v1242_v50, %v1236_v33 }
 0x515   : > { %v732_v52 = vpack.c.bf16 %v731_v51, %v731_v51 }
 0x517   : > { %1091 = vmatmul.msk.bf16.vlgmr.msrb.gmra.mxu2 %vm525_vm6, %v732_v52 }
 0x554   : > { %v692_v53 = vpop.f32.mrf.mxu1 }
 0x555   : > { %v696_v54 = vpack.c.bf16 %v692_v53, %v692_v53  ;;  %v1155_v53 = vld [vmem:[%s1633_s11 + $0x18] sm:$0xff] }
 0x556   : > { %983 = vmatpush.bf16.msrb.mxu3 %v1155_v53 }
 0x557   : > { %v761_v55 = vunpack.c.l.b16 %v696_v54 }
 0x559   : > { %v762_v56 = vpack.c.b16 %v761_v55, %v761_v55 }
 0x55b   : > { %763 = vrot.lane.b32.xlu0 %v762_v56, %s1327_s22  ;;  %v1154_v56 = vld [vmem:[%s1633_s11 + $0x10] sm:$0xff]  ;;  %s1073_s22 = sshll.u32 %s429_s21, 3 }
 0x55c   : > { %v694_v57 = vpop.f32.mrf.mxu1  ;;  %984 = vmatpush.bf16.msrb.mxu3 %v1154_v56  ;;  %s431_s16 = scalar_lea.vmem [#allocation2], %s1073_s22  ;;  %s1271_s22 = scalar_lea.hbm %s1635_s13, 16 }
 0x55d   : > { %s1007_s20 = sshll.u32 %s431_s16, 4  ;;  %s1008_s20 = int_to_ptr.vmem [resolvable:$true] %s1007_s20 }
 0x568   : > { %v634_v58 = vpop.f32.mrf.mxu2 }
 0x569   : > { %v638_v59 = vpack.c.bf16 %v634_v58, %v634_v58 }
 0x56b   : > { %v756_v60 = vunpack.c.l.b16 %v638_v59 }
 0x56d   : > { %v757_v61 = vpack.c.b16 %v756_v60, %v756_v60  ;;  %v1153_v60 = vld [vmem:[%s1633_s11 + $0x8] sm:$0xff] }
 0x56e   : > { %985 = vmatpush.bf16.msrb.mxu3 %v1153_v60 }
 0x56f   : > { %758 = vrot.lane.b32.xlu2 %v757_v61, %s1328_s23  ;;  %s1143_s23 = sshll.u32 %s1422_s29, 3  ;;  %s995_s29 = scalar_lea.sflag [#allocation3], %s429_s21 }
 0x570   : > { %v636_v62 = vpop.f32.mrf.mxu2  ;;  %s1005_s1 = scalar_lea.hbm %s1635_s13, %s1143_s23 }
 0x571   : > { %s1009_s2 = sshll.u32 %s1005_s1, 4  ;;  %s1010_s2 = int_to_ptr.hbm [resolvable:$true] %s1009_s2 }
 0x572   : > { %s1265_s3 = sshra.s32 %s1010_s2, 4  ;;  %s1266_s3 = int_to_ptr.hbm [resolvable:$true] %s1265_s3 }
 0x573   : > { %p1272_p0 = scmp.lt.s32.totalorder %s1266_s3, %s1635_s13 }
 0x59a   : > { %v750_v63 = vpop.f32.mrf.mxu2 }
 0x59b   : > { %v754_v1 = vpack.c.bf16 %v750_v63, %v750_v63  ;;  %v1152_v63 = vld [vmem:[%s1633_s11] sm:$0xff] }
 0x59c   : > { %986 = vmatpush.bf16.msrb.mxu3 %v1152_v63 }
 0x59d   : > { %v766_v2 = vunpack.c.l.b16 %v754_v1 }
 0x59f   : > { %v767_v3 = vpack.c.b16 %v766_v2, %v766_v2 }
 0x5a1   : > { %768 = vrot.lane.b32.xlu2 %v767_v3, %s1329_s24  ;;  %s1267_s24 = scalar_lea.hbm %s1266_s3, 8 }
 0x5a2   : > { %v752_v4 = vpop.f32.mrf.mxu2  ;;  %p1268_p11 = scmp.ne.s32.totalorder %s1266_s3, %s1267_s24  ;;  %p1273_p1 = scmp.lt.s32.totalorder %s1271_s22, %s1267_s24 }
 0x5a4   : > { %p1269_p12 = pnand %p1268_p11, %p1439_p5  ;;  %p1274_p2 = por %p1273_p1, %p1272_p0 }
 0x5a6   : > { %p1270_p13 = pneg %p1269_p12 }
 0x5a8   : > { %p1275_p3 = pnand %p1274_p2, %p1270_p13 }
 0x5c9   : > { %v759_v8 = vpop.permute.xlu2 %758 }
 0x5ca   : > { %v772_v11 = vsel %vm525_vm6, %v580_v9, %v759_v8  ;;  %v1330_v9 = vmov 1065369472  }
 0x5cd   : > { %v764_v10 = vpop.permute.xlu0 %763 }
 0x5ce   : > { %v775_v13 = vsel %vm773_vm7, %v772_v11, %v764_v10  ;;  %v899_v10 = vunpack.c.h.bf16 %v1330_v9  ;;  %v900_v11 = vunpack.c.l.bf16 %v1330_v9 }
 0x5fb   : > { %v769_v14 = vpop.permute.xlu2 %768 }
 0x5fc   : > { %v778_v15 = vsel %vm776_vm8, %v775_v13, %v769_v14 }
 0x5fd   : > { %1100 = vmatmul.msk.bf16.vlgmr.msra.gmra.mxu0 %vm439_vm0, %v778_v15 }
 0x67a   : > { %v810_v17 = vpop.f32.mrf.mxu0 }
 0x67b   : > { %v811_v18 = vadd.f32 %v1218_v16, %v810_v17 }
 0x67d   : > { %v1535_v19 = vadd.f32 %v811_v18, %v1454_v0  ;;  %v1150_v0 = vld [vmem:[%s1631_s9] sm:$0xff] }
 0x67e   : > { %881 = vmatpush.bf16.msra.mxu1 %v1150_v0 }
 0x67f   : > { %v815_v5 = vsel %vm439_vm0, %v1535_v19, 0.0  ;;  %v819_v20 = vmul.f32 %v1535_v19, %v1535_v19 }
 0x680   : > { %816 = vadd.xlane.f32.xlu0 %v815_v5 }
 0x681   : > { %v820_v21 = vsel %vm439_vm0, %v819_v20, 0.0 }
 0x682   : > { %v812_v22 = vpop.f32.mrf.mxu0  ;;  %821 = vadd.xlane.f32.xlu1 %v820_v21  ;;  %v1222_v21 = vld [vmem:[%s1634_s12] ss:$0 sm:$0xff] }
 0x6f3   : > { %v817_v24 = vpop.xlane.xlu0 %816 }
 0x6f4   : > { %v818_v25 = vmul.f32 %v817_v24, %v1464_v12 }
 0x6f5   : > { %v822_v26 = vpop.xlane.xlu1 %821 }
 0x6f6   : > { %v824_v27 = vmul.f32 %v818_v25, %v818_v25  ;;  %v823_v28 = vmul.f32 %v822_v26, %v1464_v12  ;;  %v827_v38 = vsub.f32 %v1535_v19, %v818_v25 }
 0x6f8   : > { %v825_v29 = vsub.f32 %v823_v28, %v824_v27 }
 0x6fa   : > { %v826_v30 = vmax.f32 %v825_v29, 0.0 }
 0x6fc   : > { %v828_v31 = vadd.f32 1e-05, %v826_v30 }
 0x6fe   : > { %1243 = vrsqrt.f32 %v828_v31  ;;  %vm835_vm10 = vweird.f32 %v828_v31 }
 0x704   : > { %v1244_v32 = vpop.eup %1243 }
 0x705   : > { %v830_v33 = vmul.f32 %v1244_v32, %v828_v31  ;;  %vm836_vm9 = vweird.f32 %v1244_v32 }
 0x706   : > { %vm837_vm11 = vmor %vm835_vm10, %vm836_vm9 }
 0x707   : > { %v831_v34 = vmul.f32 %v1244_v32, %v830_v33 }
 0x709   : > { %v832_v35 = vmul.f32 0.5, %v831_v34 }
 0x70b   : > { %v833_v36 = vsub.f32 1.5, %v832_v35 }
 0x70d   : > { %v834_v37 = vmul.f32 %v1244_v32, %v833_v36 }
 0x70f   : > { %v838_v12 = vsel %vm837_vm11, %v1244_v32, %v834_v37 }
 0x710   : > { %v839_v41 = vmul.f32 %v838_v12, %v827_v38 }
 0x712   : > { %v844_v40 = vmul.f32 %v1219_v39, %v839_v41 }
 0x714   : > { %v849_v43 = vadd.f32 %v1220_v42, %v844_v40 }
 0x716   : > { %v850_v44 = vpack.c.bf16 %v849_v43, %v849_v43 }
 0x718   : > { %1109 = vmatmul.msk.bf16.vlgmr.msra.gmra.mxu1 %vm439_vm0, %v850_v44 }
 0x795   : > { %v883_v50 = vpop.f32.mrf.mxu1 }
 0x796   : > { %v884_v51 = vadd.f32 %v1221_v48, %v883_v50 }
 0x798   : > { %v887_v52 = vpack.c.bf16 %v884_v51, %v884_v51 }
 0x79a   : > { %v888_v54 = vunpack.c.l.bf16 %v887_v52 }
 0x79c   : > { %v889_v55 = vmul.f32 1.703125, %v888_v54 }
 0x79d   : > { %v885_v57 = vpop.f32.mrf.mxu1 }
 0x79e   : > { %v890_v58 = vpack.c.bf16 %v889_v55, %v889_v55 }
 0x7a0   : > { %v891_v59 = vxor.u32 2147516416, %v890_v58 }
 0x7a2   : > { %v892_v61 = vunpack.c.l.bf16 %v891_v59 }
 0x7a4   : > { %v893_v62 = vmul.f32 1.442695, %v892_v61 }
 0x7a6   : > { %1245 = vpow2.f32 %v893_v62 }
 0x7ac   : > { %v1246_v1 = vpop.eup %1245 }
 0x7ad   : > { %v895_v2 = vpack.c.bf16 %v1246_v1, %v1246_v1 }
 0x7af   : > { %v896_v3 = vunpack.c.l.bf16 %v895_v2 }
 0x7b1   : > { %v897_v4 = vadd.f32 1.0, %v896_v3 }
 0x7b3   : > { %v898_v6 = vpack.c.bf16 %v897_v4, %v897_v4 }
 0x7b5   : > { %v901_v7 = vunpack.c.h.bf16 %v898_v6  ;;  %v902_v8 = vunpack.c.l.bf16 %v898_v6 }
 0x7b7   : > { %1247 = vrcp.f32 %v901_v7 }
 0x7b8   : > { %1249 = vrcp.f32 %v902_v8 }
 0x7bd   : > { %v1248_v13 = vpop.eup %1247 }
 0x7be   : > { %v1250_v14 = vpop.eup %1249  ;;  %v904_v15 = vmul.f32 %v1248_v13, %v899_v10 }
 0x7bf   : > { %v906_v16 = vmul.f32 %v1250_v14, %v900_v11 }
 0x7c1   : > { %v907_v17 = vpack.c.bf16 %v904_v15, %v906_v16 }
 0x7c3   : > { %v908_v18 = vunpack.c.l.bf16 %v907_v17 }
 0x7c5   : > { %v909_v5 = vmul.f32 %v908_v18, %v888_v54 }
 0x7c7   : > { %v910_v20 = vpack.c.bf16 %v909_v5, %v909_v5 }
 0x7c9   : > { %987 = vmatmul.bf16.vlgmr.msrb.gmra.mxu3 %v910_v20 }
 0x84c   : > { %v988_v22 = vpop.f32.mrf.mxu3 }
 0x84d   : > { %v989_v23 = vadd.f32 %v1222_v21, %v988_v22 }
 0x84f   : > { %v992_v0 = vadd.f32 %v989_v23, %v1535_v19 }
 0x851   : > { %993 = vst.msk [vmem:[%s431_s16] sm:$0xff] %vm439_vm0, %v992_v0 }
 0x852   : > { %1278 = shalt.err (!%p1275_p3)
}
 0x853   : > { %1160 = dma.vmem_to_hbm [thread:$0]  (%p1439_p5), %s1008_s20, 128, %s1010_s2, %s995_s29  }
 0x854   : > { %v990_v19 = vpop.f32.mrf.mxu3 }
 0x855 PF: > { %p1166_p4 = scmp.ge.s32.totalorder %s1313_s28, 2  ;;  %s1021_s21 = sand.u32 1, %s1301_s25  }
 0x856   : > { %s1022_s1 = scalar_lea.sflag [#allocation3], %s1021_s21 }
 0x857   : > { %p1163_p7 = pnand %p1166_p4, %p1443_p6 }
 0x859   : > { %p1164_p8 = pneg %p1163_p7 }
 0x85b   : > { %1296 = dma.done.wait (%p1164_p8), %s1022_s1, 128  }
 0x85c   : > { %1298 = vsyncadd (%p1164_p8), %s1022_s1, 4294967168  ;;  %p23_p9 = scmp.ge.s32.totalorder %s1426_s14, 4   ;;  %s1646_s25 = smov %s1305_s26 }
 0x85d   : > { %s1647_s26 = smov %s1309_s27  ;;  %s1648_s27 = smov %s1437_s17 }
 0x85e   : > { %s1649_s28 = smov %s1426_s14  ;;  %25 = sbr.rel (!%p23_p9) target bundleno = 8 (0x8), region = 107 }
 0x863   :  { %1028 = vsyncpa [#allocation3], 1 }
 0x864   :  { %1030 = vsyncpa [#allocation3 + $0x1], 1 }

</bundles_post_ra>
